<compile_context>
chip_gen: v6e
topology: v6e:2x2x1
jax: 0.10.0
libtpu: 0.0.40
codegen_flags: <defaults>
</compile_context>

<pallas_src>
import functools

import jax
import jax.numpy as jnp
from jax.experimental import pallas as pl
from jax.experimental.pallas import tpu as pltpu


def _mha_head_kernel(x_ref, wq_ref, wk_ref, wv_ref, bq_ref, bk_ref, bv_ref,
                     wp_ref, bp_ref, o_ref, acc_ref, *, mm_dtype):
    """One (batch, head) grid step: full attention for a single head, fused
    with its slice of the QKV and output projections."""
    h = pl.program_id(1)
    last_h = pl.num_programs(1) - 1

    @pl.when(h == 0)
    def _():
        acc_ref[...] = jnp.zeros_like(acc_ref)

    x = x_ref[...]                                                # (N, C)

    # Per-head projections, f32 accumulate.  Scale already folded into Wq/bq.
    q = jnp.dot(x, wq_ref[...], preferred_element_type=jnp.float32)
    q = q + bq_ref[...].astype(jnp.float32)                       # (N, d)
    k = jnp.dot(x, wk_ref[...], preferred_element_type=jnp.float32)
    k = k + bk_ref[...].astype(jnp.float32)                       # (N, d)
    v = jnp.dot(x, wv_ref[...], preferred_element_type=jnp.float32)
    v = v + bv_ref[...].astype(jnp.float32)                       # (N, d)

    # Scores: q @ k^T without materializing a transpose.  (N, N) in f32.
    s = jax.lax.dot_general(q.astype(mm_dtype), k.astype(mm_dtype),
                            (((1,), (1,)), ((), ())),
                            preferred_element_type=jnp.float32)
    s = s - jnp.max(s, axis=-1, keepdims=True)
    p = jnp.exp(s)                                                # unnormalized
    denom = jnp.sum(p, axis=-1, keepdims=True)                    # (N, 1)

    # Deferred normalization: PV first, then scale the (N, d) result by the
    # EUP approximate reciprocal of the row sums.
    o_h = jnp.dot(p.astype(mm_dtype), v.astype(mm_dtype),
                  preferred_element_type=jnp.float32)             # (N, d)
    o_h = o_h * pl.reciprocal(denom, approx=True)

    # Accumulate this head's slice of the output projection.
    acc_ref[...] += jnp.dot(o_h.astype(mm_dtype), wp_ref[...],
                            preferred_element_type=jnp.float32)   # (N, C)

    @pl.when(h == last_h)
    def _():
        o_ref[...] = (acc_ref[...]
                      + bp_ref[...].astype(jnp.float32)).astype(o_ref.dtype)


def attention(x, w_qkv, b_qkv, w_proj, b_proj, num_heads):
    """Fused MHA forward.

    x      : (B, N, C)
    w_qkv  : (3C, C)  PyTorch nn.Linear weight (out_features, in_features)
    b_qkv  : (3C,)
    w_proj : (C, C)   PyTorch nn.Linear weight
    b_proj : (C,)
    """
    B, N, C = x.shape
    assert C % num_heads == 0
    H = num_heads
    d = C // H
    scale = float(d) ** -0.5

    # ---- one-time, setup-side weight preparation (outside the hot path) ----
    # Head-major (in, out) layout so each grid step gets a contiguous,
    # lane-dense per-head weight tile straight from its BlockSpec.
    wq = jnp.transpose(w_qkv[0:C].reshape(H, d, C), (0, 2, 1)) * scale  # (H,C,d)
    wk = jnp.transpose(w_qkv[C:2 * C].reshape(H, d, C), (0, 2, 1))      # (H,C,d)
    wv = jnp.transpose(w_qkv[2 * C:3 * C].reshape(H, d, C), (0, 2, 1))  # (H,C,d)
    bq = (b_qkv[0:C] * scale).reshape(H, 1, d)
    bk = b_qkv[C:2 * C].reshape(H, 1, d)
    bv = b_qkv[2 * C:3 * C].reshape(H, 1, d)
    wp = w_proj.T.reshape(H, d, C)                                      # (H,d,C)
    bp = b_proj.reshape(1, C)

    # bf16 models run the attention matmuls in bf16 (f32 accumulate); f32
    # models stay in f32 (the casts below are then no-ops).
    mm_dtype = jnp.bfloat16 if x.dtype == jnp.bfloat16 else jnp.float32

    itemsize = jnp.dtype(x.dtype).itemsize
    cost = pl.CostEstimate(
        flops=(2 * B * N * C * 3 * C            # qkv projection
               + 2 * 2 * B * H * N * N * d      # q@k^T and p@v
               + 2 * B * N * C * C),            # output projection
        transcendentals=B * H * N * (N + 1),    # exp + reciprocal
        bytes_accessed=itemsize * (2 * B * N * C) + 4 * (wq.size + wk.size
                       + wv.size + wp.size + bq.size + bk.size + bv.size
                       + bp.size),
    )

    kernel = functools.partial(_mha_head_kernel, mm_dtype=mm_dtype)

    # Grid: batch (parallel, split across TensorCores) x heads (reduction into
    # the resident output accumulator).  Weights use head-indexed / constant
    # index maps and stay resident in VMEM.
    return pl.pallas_call(
        kernel,
        out_shape=jax.ShapeDtypeStruct((B, N, C), x.dtype),
        grid=(B, H),
        in_specs=[
            pl.BlockSpec((None, N, C), lambda b, h: (b, 0, 0)),   # x
            pl.BlockSpec((None, C, d), lambda b, h: (h, 0, 0)),   # W_q (scaled)
            pl.BlockSpec((None, C, d), lambda b, h: (h, 0, 0)),   # W_k
            pl.BlockSpec((None, C, d), lambda b, h: (h, 0, 0)),   # W_v
            pl.BlockSpec((None, 1, d), lambda b, h: (h, 0, 0)),   # b_q (scaled)
            pl.BlockSpec((None, 1, d), lambda b, h: (h, 0, 0)),   # b_k
            pl.BlockSpec((None, 1, d), lambda b, h: (h, 0, 0)),   # b_v
            pl.BlockSpec((None, d, C), lambda b, h: (h, 0, 0)),   # W_proj slice
            pl.BlockSpec((1, C), lambda b, h: (0, 0)),            # b_proj
        ],
        out_specs=pl.BlockSpec((None, N, C), lambda b, h: (b, 0, 0)),
        scratch_shapes=[pltpu.VMEM((N, C), jnp.float32)],         # out accumulator
        compiler_params=pltpu.CompilerParams(
            dimension_semantics=("parallel", "arbitrary"),
            vmem_limit_bytes=64 * 1024 * 1024,
        ),
        cost_estimate=cost,
    )(x, wq, wk, wv, bq, bk, bv, wp, bp)


def attention_ref(x, w_qkv, b_qkv, w_proj, b_proj, num_heads):
    """Pure-JAX reference mirroring the PyTorch module exactly."""
    B, N, C = x.shape
    d = C // num_heads
    qkv = x @ w_qkv.T + b_qkv                                   # (B, N, 3C)
    qkv = qkv.reshape(B, N, 3, num_heads, d).transpose(2, 0, 3, 1, 4)
    q, k, v = qkv[0], qkv[1], qkv[2]                            # (B, H, N, d)
    attn = (q @ jnp.swapaxes(k, -2, -1)) * (float(d) ** -0.5)
    attn = jax.nn.softmax(attn, axis=-1)
    ctx = jnp.swapaxes(attn @ v, 1, 2).reshape(B, N, C)
    return ctx @ w_proj.T + b_proj


if __name__ == "__main__":
    # Small shapes consistent with the module: batch=2, seq=8, hidden=32, heads=4.
    B, N, C, H = 2, 8, 32, 4

    key = jax.random.PRNGKey(0)
    kx, kwq, kbq, kwp, kbp = jax.random.split(key, 5)
    x = jax.random.normal(kx, (B, N, C), dtype=jnp.float32)
    # PyTorch nn.Linear layout: weight (out_features, in_features).
    w_qkv = jax.random.normal(kwq, (3 * C, C), dtype=jnp.float32) * 0.05
    b_qkv = jax.random.normal(kbq, (3 * C,), dtype=jnp.float32) * 0.05
    w_proj = jax.random.normal(kwp, (C, C), dtype=jnp.float32) * 0.05
    b_proj = jax.random.normal(kbp, (C,), dtype=jnp.float32) * 0.05

    out = attention(x, w_qkv, b_qkv, w_proj, b_proj, H)
    out = jax.block_until_ready(out)

    ref = attention_ref(x, w_qkv, b_qkv, w_proj, b_proj, H)
    assert out.shape == (B, N, C)
    # Tolerance is slightly looser than pure f32 because the softmax
    # normalization uses the EUP approximate reciprocal (perf feedback).
    assert jnp.allclose(out, ref, atol=2e-3, rtol=2e-3), \
        float(jnp.max(jnp.abs(out - ref)))

    print("KERNEL_OK")
</pallas_src>

<mosaic_0001>
module attributes {stable_mosaic.version = 11 : i64} {
  func.func @_mha_head_kernel(%arg0: i32, %arg1: i32, %arg2: memref<1x8x32xf32, #tpu.memory_space<vmem>>, %arg3: memref<1x32x8xf32, #tpu.memory_space<vmem>>, %arg4: memref<1x32x8xf32, #tpu.memory_space<vmem>>, %arg5: memref<1x32x8xf32, #tpu.memory_space<vmem>>, %arg6: memref<1x1x8xf32, #tpu.memory_space<vmem>>, %arg7: memref<1x1x8xf32, #tpu.memory_space<vmem>>, %arg8: memref<1x1x8xf32, #tpu.memory_space<vmem>>, %arg9: memref<1x8x32xf32, #tpu.memory_space<vmem>>, %arg10: memref<1x32xf32, #tpu.memory_space<vmem>>, %arg11: memref<1x8x32xf32, #tpu.memory_space<vmem>>, %arg12: memref<8x32xf32, #tpu.memory_space<vmem>>) attributes {dimension_semantics = [#tpu.dimension_semantics<parallel>, #tpu.dimension_semantics<arbitrary>], iteration_bounds = array<i64: 2, 4>, scalar_prefetch = 0 : i64, scratch_operands = 1 : i64, tpu.core_type = #tpu.core_type<tc>, window_params = [{transform_indices = @transform_0, window_bounds = array<i64: 1, 8, 32>}, {transform_indices = @transform_1, window_bounds = array<i64: 1, 32, 8>}, {transform_indices = @transform_2, window_bounds = array<i64: 1, 32, 8>}, {transform_indices = @transform_3, window_bounds = array<i64: 1, 32, 8>}, {transform_indices = @transform_4, window_bounds = array<i64: 1, 1, 8>}, {transform_indices = @transform_5, window_bounds = array<i64: 1, 1, 8>}, {transform_indices = @transform_6, window_bounds = array<i64: 1, 1, 8>}, {transform_indices = @transform_7, window_bounds = array<i64: 1, 8, 32>}, {pipeline_mode = #tpu.pipeline_mode<synchronous>, transform_indices = @transform_8, window_bounds = array<i64: 1, 32>}, {transform_indices = @transform_9, window_bounds = array<i64: 1, 8, 32>}]} {
    %c0_i32 = arith.constant 0 : i32
    %0 = arith.cmpi eq, %arg1, %c0_i32 : i32
    %1 = arith.extui %0 : i1 to i32
    %c0_i32_0 = arith.constant 0 : i32
    %2 = arith.cmpi ne, %1, %c0_i32_0 : i32
    scf.if %2 {
      %cst_36 = arith.constant 0.000000e+00 : f32
      %47 = vector.broadcast %cst_36 : f32 to vector<8x32xf32>
      %c0_37 = arith.constant 0 : index
      %c0_38 = arith.constant 0 : index
      %48 = vector.load %arg12[%c0_37, %c0_38] : memref<8x32xf32, #tpu.memory_space<vmem>>, vector<8x32xf32>
      tpu.vector_store %arg12[%c0_37, %c0_38], %47 {strides = array<i32>} : memref<8x32xf32, #tpu.memory_space<vmem>>, vector<8x32xf32>,
    } else {
    }
    %c0 = arith.constant 0 : index
    %c0_1 = arith.constant 0 : index
    %c0_2 = arith.constant 0 : index
    %3 = vector.load %arg2[%c0, %c0_1, %c0_2] : memref<1x8x32xf32, #tpu.memory_space<vmem>>, vector<1x8x32xf32>
    %4 = vector.shape_cast %3 : vector<1x8x32xf32> to vector<8x32xf32>
    %c0_3 = arith.constant 0 : index
    %c0_4 = arith.constant 0 : index
    %c0_5 = arith.constant 0 : index
    %5 = vector.load %arg3[%c0_3, %c0_4, %c0_5] : memref<1x32x8xf32, #tpu.memory_space<vmem>>, vector<1x32x8xf32>
    %6 = vector.shape_cast %5 : vector<1x32x8xf32> to vector<32x8xf32>
    %cst = arith.constant dense<0.000000e+00> : vector<8x8xf32>
    %7 = tpu.matmul %4, %6, %cst {dimension_numbers = #tpu.dot_dimension_numbers<[1], [0], [0], [1], [0, 0, 1, 1], [], []>} : vector<8x32xf32>, vector<32x8xf32>, vector<8x8xf32> -> vector<8x8xf32>
    %c0_6 = arith.constant 0 : index
    %c0_7 = arith.constant 0 : index
    %c0_8 = arith.constant 0 : index
    %8 = vector.load %arg6[%c0_6, %c0_7, %c0_8] : memref<1x1x8xf32, #tpu.memory_space<vmem>>, vector<1x1x8xf32>
    %9 = vector.shape_cast %8 : vector<1x1x8xf32> to vector<1x8xf32>
    %10 = vector.broadcast %9 : vector<1x8xf32> to vector<8x8xf32>
    %11 = arith.addf %7, %10 : vector<8x8xf32>
    %c0_9 = arith.constant 0 : index
    %c0_10 = arith.constant 0 : index
    %c0_11 = arith.constant 0 : index
    %12 = vector.load %arg4[%c0_9, %c0_10, %c0_11] : memref<1x32x8xf32, #tpu.memory_space<vmem>>, vector<1x32x8xf32>
    %13 = vector.shape_cast %12 : vector<1x32x8xf32> to vector<32x8xf32>
    %cst_12 = arith.constant dense<0.000000e+00> : vector<8x8xf32>
    %14 = tpu.matmul %4, %13, %cst_12 {dimension_numbers = #tpu.dot_dimension_numbers<[1], [0], [0], [1], [0, 0, 1, 1], [], []>} : vector<8x32xf32>, vector<32x8xf32>, vector<8x8xf32> -> vector<8x8xf32>
    %c0_13 = arith.constant 0 : index
    %c0_14 = arith.constant 0 : index
    %c0_15 = arith.constant 0 : index
    %15 = vector.load %arg7[%c0_13, %c0_14, %c0_15] : memref<1x1x8xf32, #tpu.memory_space<vmem>>, vector<1x1x8xf32>
    %16 = vector.shape_cast %15 : vector<1x1x8xf32> to vector<1x8xf32>
    %17 = vector.broadcast %16 : vector<1x8xf32> to vector<8x8xf32>
    %18 = arith.addf %14, %17 : vector<8x8xf32>
    %c0_16 = arith.constant 0 : index
    %c0_17 = arith.constant 0 : index
    %c0_18 = arith.constant 0 : index
    %19 = vector.load %arg5[%c0_16, %c0_17, %c0_18] : memref<1x32x8xf32, #tpu.memory_space<vmem>>, vector<1x32x8xf32>
    %20 = vector.shape_cast %19 : vector<1x32x8xf32> to vector<32x8xf32>
    %cst_19 = arith.constant dense<0.000000e+00> : vector<8x8xf32>
    %21 = tpu.matmul %4, %20, %cst_19 {dimension_numbers = #tpu.dot_dimension_numbers<[1], [0], [0], [1], [0, 0, 1, 1], [], []>} : vector<8x32xf32>, vector<32x8xf32>, vector<8x8xf32> -> vector<8x8xf32>
    %c0_20 = arith.constant 0 : index
    %c0_21 = arith.constant 0 : index
    %c0_22 = arith.constant 0 : index
    %22 = vector.load %arg8[%c0_20, %c0_21, %c0_22] : memref<1x1x8xf32, #tpu.memory_space<vmem>>, vector<1x1x8xf32>
    %23 = vector.shape_cast %22 : vector<1x1x8xf32> to vector<1x8xf32>
    %24 = vector.broadcast %23 : vector<1x8xf32> to vector<8x8xf32>
    %25 = arith.addf %21, %24 : vector<8x8xf32>
    %cst_23 = arith.constant dense<0.000000e+00> : vector<8x8xf32>
    %26 = tpu.matmul %11, %18, %cst_23 {dimension_numbers = #tpu.dot_dimension_numbers<[1], [1], [0], [0], [0, 0, 1, 0], [], []>} : vector<8x8xf32>, vector<8x8xf32>, vector<8x8xf32> -> vector<8x8xf32>
    %cst_24 = arith.constant dense<0xFF800000> : vector<8xf32>
    %27 = vector.multi_reduction <maximumf>, %26, %cst_24 [1] : vector<8x8xf32> to vector<8xf32>
    %28 = vector.shape_cast %27 : vector<8xf32> to vector<8x1xf32>
    %29 = vector.broadcast %28 : vector<8x1xf32> to vector<8x8xf32>
    %30 = arith.subf %26, %29 : vector<8x8xf32>
    %31 = math.exp %30 : vector<8x8xf32>
    %cst_25 = arith.constant dense<0.000000e+00> : vector<8xf32>
    %32 = vector.multi_reduction <add>, %31, %cst_25 [1] : vector<8x8xf32> to vector<8xf32>
    %33 = vector.shape_cast %32 : vector<8xf32> to vector<8x1xf32>
    %cst_26 = arith.constant dense<0.000000e+00> : vector<8x8xf32>
    %34 = tpu.matmul %31, %25, %cst_26 {dimension_numbers = #tpu.dot_dimension_numbers<[1], [0], [0], [1], [0, 0, 1, 1], [], []>} : vector<8x8xf32>, vector<8x8xf32>, vector<8x8xf32> -> vector<8x8xf32>
    %35 = tpu.reciprocal %33 {approx = true} : vector<8x1xf32> -> vector<8x1xf32>
    %36 = vector.broadcast %35 : vector<8x1xf32> to vector<8x8xf32>
    %37 = arith.mulf %34, %36 : vector<8x8xf32>
    %c0_27 = arith.constant 0 : index
    %c0_28 = arith.constant 0 : index
    %38 = vector.load %arg12[%c0_27, %c0_28] : memref<8x32xf32, #tpu.memory_space<vmem>>, vector<8x32xf32>
    %c0_29 = arith.constant 0 : index
    %c0_30 = arith.constant 0 : index
    %c0_31 = arith.constant 0 : index
    %39 = vector.load %arg9[%c0_29, %c0_30, %c0_31] : memref<1x8x32xf32, #tpu.memory_space<vmem>>, vector<1x8x32xf32>
    %40 = vector.shape_cast %39 : vector<1x8x32xf32> to vector<8x32xf32>
    %cst_32 = arith.constant dense<0.000000e+00> : vector<8x32xf32>
    %41 = tpu.matmul %37, %40, %cst_32 {dimension_numbers = #tpu.dot_dimension_numbers<[1], [0], [0], [1], [0, 0, 1, 1], [], []>} : vector<8x8xf32>, vector<8x32xf32>, vector<8x32xf32> -> vector<8x32xf32>
    %42 = arith.addf %38, %41 : vector<8x32xf32>
    %c0_33 = arith.constant 0 : index
    %c0_34 = arith.constant 0 : index
    %43 = vector.load %arg12[%c0_33, %c0_34] : memref<8x32xf32, #tpu.memory_space<vmem>>, vector<8x32xf32>
    tpu.vector_store %arg12[%c0_33, %c0_34], %42 {strides = array<i32>} : memref<8x32xf32, #tpu.memory_space<vmem>>, vector<8x32xf32>,
    %c3_i32 = arith.constant 3 : i32
    %44 = arith.cmpi eq, %arg1, %c3_i32 : i32
    %45 = arith.extui %44 : i1 to i32
    %c0_i32_35 = arith.constant 0 : i32
    %46 = arith.cmpi ne, %45, %c0_i32_35 : i32
    scf.if %46 {
      %c0_36 = arith.constant 0 : index
      %c0_37 = arith.constant 0 : index
      %47 = vector.load %arg12[%c0_36, %c0_37] : memref<8x32xf32, #tpu.memory_space<vmem>>, vector<8x32xf32>
      %c0_38 = arith.constant 0 : index
      %c0_39 = arith.constant 0 : index
      %48 = vector.load %arg10[%c0_38, %c0_39] : memref<1x32xf32, #tpu.memory_space<vmem>>, vector<1x32xf32>
      %49 = vector.broadcast %48 : vector<1x32xf32> to vector<8x32xf32>
      %50 = arith.addf %47, %49 : vector<8x32xf32>
      %c0_40 = arith.constant 0 : index
      %c0_41 = arith.constant 0 : index
      %c0_42 = arith.constant 0 : index
      %51 = vector.load %arg11[%c0_40, %c0_41, %c0_42] : memref<1x8x32xf32, #tpu.memory_space<vmem>>, vector<1x8x32xf32>
      %52 = vector.shape_cast %51 : vector<1x8x32xf32> to vector<8x32xf32>
      %53 = vector.shape_cast %50 : vector<8x32xf32> to vector<1x8x32xf32>
      tpu.vector_store %arg11[%c0_40, %c0_41, %c0_42], %53 {strides = array<i32>} : memref<1x8x32xf32, #tpu.memory_space<vmem>>, vector<1x8x32xf32>,
    } else {
    }
    return
  }
  func.func @transform_0(%arg0: i32, %arg1: i32) -> (i32, i32, i32) {
    %c0_i32 = arith.constant 0 : i32
    %c0_i32_0 = arith.constant 0 : i32
    %c0_i32_1 = arith.constant 0 : i32
    return %arg0, %c0_i32, %c0_i32_0 : i32, i32, i32
  }
  func.func @transform_1(%arg0: i32, %arg1: i32) -> (i32, i32, i32) {
    %c0_i32 = arith.constant 0 : i32
    %c0_i32_0 = arith.constant 0 : i32
    %c0_i32_1 = arith.constant 0 : i32
    return %arg1, %c0_i32, %c0_i32_0 : i32, i32, i32
  }
  func.func @transform_2(%arg0: i32, %arg1: i32) -> (i32, i32, i32) {
    %c0_i32 = arith.constant 0 : i32
    %c0_i32_0 = arith.constant 0 : i32
    %c0_i32_1 = arith.constant 0 : i32
    return %arg1, %c0_i32, %c0_i32_0 : i32, i32, i32
  }
  func.func @transform_3(%arg0: i32, %arg1: i32) -> (i32, i32, i32) {
    %c0_i32 = arith.constant 0 : i32
    %c0_i32_0 = arith.constant 0 : i32
    %c0_i32_1 = arith.constant 0 : i32
    return %arg1, %c0_i32, %c0_i32_0 : i32, i32, i32
  }
  func.func @transform_4(%arg0: i32, %arg1: i32) -> (i32, i32, i32) {
    %c0_i32 = arith.constant 0 : i32
    %c0_i32_0 = arith.constant 0 : i32
    %c0_i32_1 = arith.constant 0 : i32
    return %arg1, %c0_i32, %c0_i32_0 : i32, i32, i32
  }
  func.func @transform_5(%arg0: i32, %arg1: i32) -> (i32, i32, i32) {
    %c0_i32 = arith.constant 0 : i32
    %c0_i32_0 = arith.constant 0 : i32
    %c0_i32_1 = arith.constant 0 : i32
    return %arg1, %c0_i32, %c0_i32_0 : i32, i32, i32
  }
  func.func @transform_6(%arg0: i32, %arg1: i32) -> (i32, i32, i32) {
    %c0_i32 = arith.constant 0 : i32
    %c0_i32_0 = arith.constant 0 : i32
    %c0_i32_1 = arith.constant 0 : i32
    return %arg1, %c0_i32, %c0_i32_0 : i32, i32, i32
  }
  func.func @transform_7(%arg0: i32, %arg1: i32) -> (i32, i32, i32) {
    %c0_i32 = arith.constant 0 : i32
    %c0_i32_0 = arith.constant 0 : i32
    %c0_i32_1 = arith.constant 0 : i32
    return %arg1, %c0_i32, %c0_i32_0 : i32, i32, i32
  }
  func.func @transform_8(%arg0: i32, %arg1: i32) -> (i32, i32) {
    %c0_i32 = arith.constant 0 : i32
    %c0_i32_0 = arith.constant 0 : i32
    %c0_i32_1 = arith.constant 0 : i32
    return %c0_i32, %c0_i32_0 : i32, i32
  }
  func.func @transform_9(%arg0: i32, %arg1: i32) -> (i32, i32, i32) {
    %c0_i32 = arith.constant 0 : i32
    %c0_i32_0 = arith.constant 0 : i32
    %c0_i32_1 = arith.constant 0 : i32
    return %arg0, %c0_i32, %c0_i32_0 : i32, i32, i32
  }
}

</mosaic_0001>

<bundles_post_ra>
// kernel: tpu_custom_call.1
= control target key start
LH: loop header
LB: loop body
LE: loop exit
PB: predicated region body
PF: predicated region fallthrough
CT: control target
= control target key end

     0   :  { %s1674_s0 = inlined_call_operand.vmem [shape: f32[2,8,32], index: 0, kind: input, shape index: {}]   ;;  %s1675_s1 = inlined_call_operand.vmem [shape: f32[4,32,8], index: 1, kind: input, shape index: {}]   ;;  %s1676_s2 = inlined_call_operand.vmem [shape: f32[4,32,8], index: 2, kind: input, shape index: {}]   ;;  %s1677_s3 = inlined_call_operand.vmem [shape: f32[4,32,8], index: 3, kind: input, shape index: {}]   ;;  %s1678_s4 = inlined_call_operand.vmem [shape: f32[4,1,8], index: 4, kind: input, shape index: {}]   ;;  %s1679_s5 = inlined_call_operand.vmem [shape: f32[4,1,8], index: 5, kind: input, shape index: {}]   ;;  %s1680_s6 = inlined_call_operand.vmem [shape: f32[4,1,8], index: 6, kind: input, shape index: {}]   ;;  %s1681_s7 = inlined_call_operand.vmem [shape: f32[4,8,32], index: 7, kind: input, shape index: {}]   ;;  %s1682_s8 = inlined_call_operand.vmem [shape: f32[1,32], index: 8, kind: input, shape index: {}]   ;;  %s1683_s9 = inlined_call_operand.hbm [shape: f32[2,8,32], index: 9, kind: output, shape index: {}]  }
   0x1   :  { %1696 = sst [smem:[#allocation16_spill]] %s1674_s0 }
   0x2   :  { %1697 = sst [smem:[#allocation17_spill]] %s1675_s1 }
   0x3   :  { %1698 = sst [smem:[#allocation18_spill]] %s1676_s2 }
   0x4   :  { %1699 = sst [smem:[#allocation19_spill]] %s1683_s9 }
   0x5   :  { %14 = vsyncpa [#allocation4], 0 }
   0x6   :  { %16 = vsyncpa [#allocation4 + $0x1], 0  ;;  %s1453_s30 = smov 0   ;;  %s1455_s10 = smov 0  }
   0x7   :  { %s1457_s11 = smov 0   ;;  %s1459_s12 = smov 0  }
   0x8   :  { %s1461_s13 = smov 0   ;;  %s1463_s14 = smov 0  }
   0x9   :  { %s1465_s15 = smov 0   ;;  %s1467_s16 = smov 0  }
   0xa LB: > { %1700 = sst [smem:[#allocation6_spill]] %s1369_s30  ;;  %s1124_s17 = sadd.s32 4294967295, %s1397_s16   ;;  %s1397_s16 = sphi %s1467_s16, %s22_s16   ;;  %s1393_s15 = sphi %s1465_s15, %s1727_s15   ;;  %s1389_s14 = sphi %s1463_s14, %s1726_s14   ;;  %s1385_s13 = sphi %s1461_s13, %s1725_s13   ;;  %s1381_s12 = sphi %s1459_s12, %s1724_s12   ;;  %s1377_s11 = sphi %s1457_s11, %s1723_s11   ;;  %s1373_s10 = sphi %s1455_s10, %s1729_s10   ;;  %s1369_s30 = sphi %s1453_s30, %s1728_s30  }
   0xb   : > { %1701 = sst [smem:[#allocation7_spill]] %s1377_s11  ;;  %s1125_s18 = sadd.s32 4294967294, %s1397_s16  }
   0xc   : > { %1702 = sst [smem:[#allocation8_spill]] %s1389_s14  ;;  %s31_s19 = sadd.s32 1, %s1389_s14 }
   0xd   : > { %1703 = sst [smem:[#allocation9_spill]] %s1393_s15  ;;  %p32_p0 = scmp.ge.s32.totalorder %s31_s19, 4 }
   0xe   : > { %1704 = sst [smem:[#allocation10_spill]] %s1397_s16  ;;  %s34_s20 = sadd.s32 1, %s1393_s15 }
   0xf   : > { %p280_p1 = scmp.ne.s32.totalorder %s1377_s11, %s1373_s10  ;;  %p281_p2 = scmp.eq.s32.totalorder %s1124_s17, 7 }
  0x10   : > { %s1731_s19 = smov (%p32_p0, %s31_s19), 0  ;;  %s1733_s20 = smov (!%p32_p0, %s34_s20), %s1393_s15 }
  0x11   : > { %1705 = sst [smem:[#allocation11_spill]] %s1731_s19  ;;  %p1502_p3 = por %p281_p2, %p280_p1 }
  0x12   : > { %p286_p4 = scmp.ne.s32.totalorder %s1373_s10, %s1369_s30  ;;  %p36_p5 = scmp.ge.s32.totalorder %s1733_s20, 2 }
  0x13   : > { %s1706_s21 = scalar_select %p1502_p3, 1, 0 }
  0x14   : > { %p287_p6 = scmp.eq.s32.totalorder %s1125_s18, 7  ;;  %p1128_p7 = scmp.ge.s32.totalorder %s1397_s16, 1 }
  0x15   : > { %1707 = sst [smem:[#allocation12_spill]] %s1706_s21  ;;  %p364_p8 = scmp.lt.s32.totalorder %s1397_s16, 9 }
  0x16   : > { %s1735_s20 = smov (%p36_p5, %s1733_s20), 0  ;;  %p1512_p9 = por %p287_p6, %p286_p4 }
  0x17   : > { %1708 = sst [smem:[#allocation13_spill]] %s1735_s20  ;;  %p365_p10 = pnand %p1128_p7, %p364_p8 }
  0x18   : > { %s1709_s22 = scalar_select %p1512_p9, 1, 0 }
  0x19   : > { %s267_s23 = ssub.s32 %s1393_s15, %s1735_s20  ;;  %s270_s24 = sadd.s32 1, %s1377_s11 }
  0x1a   : > { %1710 = sst [smem:[#allocation14_spill]] %s1709_s22  ;;  %p268_p11 = scmp.eq.s32.totalorder %s267_s23, 0 }
  0x1b   : > { %368 = sbr.rel (%p365_p10) target bundleno = 1032 (0x408), region = 56  ;;  %s1685_s26 = sand.u32 (!%p365_p10), 1, %s1373_s10  }
  0x1c   : > { %s1520_s25 = scalar_select %p268_p11, %s1377_s11, %s270_s24  }
  0x1d   : > { %p427_p12 = scmp.lt.s32.totalorder (!%p365_p10), %s1385_s13, 1  ;;  %s1526_s27 = sshll.u32 (!%p365_p10), %s1685_s26, 3 }
  0x1e   : > { %1711 = sst [smem:[#allocation15_spill]] %s1520_s25  ;;  %p431_p13 = scmp.lt.s32.totalorder (!%p365_p10), %s1381_s12, 3 }
  0x1f   : > { %s1712_s0 = sld [smem:[#allocation16_spill]] (!%p365_p10)  ;;  %s426_s30 = scalar_lea.vmem (!%p365_p10), [#allocation3], %s1526_s27 }
  0x20   : > { %s428_s28 = scalar_select %p427_p12, %s1385_s13, 1 }
  0x21   : > { %s1531_s29 = scalar_select %p431_p13, %s1381_s12, 3 }
  0x22   : > { %s1130_s17 = sshll.u32 %s428_s28, 3  ;;  %s1713_s1 = sld [smem:[#allocation17_spill]] }
  0x23   : > { %s1155_s20 = sshll.u32 %s1531_s29, 5  ;;  %s1714_s2 = sld [smem:[#allocation18_spill]] }
  0x24   : > { %s1552_s28 = scalar_lea.vmem %s1677_s3, %s1155_s20  ;;  %s451_s19 = scalar_lea.vmem %s1679_s5, %s1531_s29 }
  0x25   : > { %s1536_s24 = scalar_lea.vmem %s1712_s0, %s1130_s17  ;;  %s448_s17 = scalar_lea.vmem %s1678_s4, %s1531_s29 }
  0x26   : > { %s454_s9 = scalar_lea.vmem %s1680_s6, %s1531_s29  ;;  %s1137_s14 = sshll.u32 %s1531_s29, 3 }
  0x27   : > { %s1570_s21 = scalar_lea.vmem %s1681_s7, %s1137_s14  ;;  %p1138_p0 = scmp.ne.s32.totalorder %s1381_s12, 0 }
  0x28   : > { %s1542_s15 = scalar_lea.vmem %s1713_s1, %s1155_s20 }
  0x29   : > { %s1547_s11 = scalar_lea.vmem %s1714_s2, %s1155_s20  ;;  %462 = sbr.rel (%p1138_p0) target bundleno = 48 (0x30), region = 60 }
  0x2e   : > { %vm463_vm0 = vcmask 261120   ;;  %v1399_v0 = vmov 0.0  }
  0x2f   : > { %464 = vst.msk [vmem:[#allocation2] sm:$0xff] %vm463_vm0, %v1399_v0 }
  0x30 PF: > { %v554_v1 = vld [vmem:[%s1547_s11 + $0x18] sm:$0xff]  ;;  %v1400_v3 = vmov 0.0   ;;  %v553_v4 = vld [vmem:[%s1547_s11 + $0x10] sm:$0xff]  ;;  %v552_v6 = vld [vmem:[%s1547_s11 + $0x8] sm:$0xff]  ;;  %vm477_vm1 = vcmask 261120   ;;  %vm1401_vm2 = vmmov 0  }
  0x31   : > { %v469_v2 = vld [vmem:[%s1542_s15 + $0x18] sm:$0xff]  ;;  %1190 = vmatprep.subr.mxu1 %v1400_v3  ;;  %1179 = vmatprep.subr.mxu0 %v1400_v3  ;;  %v468_v5 = vld [vmem:[%s1542_s15 + $0x10] sm:$0xff]  ;;  %v467_v7 = vld [vmem:[%s1542_s15 + $0x8] sm:$0xff]  ;;  %vm713_vm3 = vcmask 64512   ;;  %p1149_p1 = scmp.ne.s32.totalorder %s1381_s12, 3 }
  0x32   : > { %1191 = vmatpush3.msra.mxu1 %v554_v1  ;;  %1180 = vmatpush3.msra.mxu0 %v469_v2  ;;  %v551_v8 = vld [vmem:[%s1547_s11] sm:$0xff]  ;;  %v635_v11 = vld [vmem:[%s1552_s28 + $0x18] sm:$0xff]  ;;  %v634_v12 = vld [vmem:[%s1552_s28 + $0x10] sm:$0xff] }
  0x33   : > { %1192 = vmatprep.subr.mxu1 %v1400_v3  ;;  %1181 = vmatprep.subr.mxu0 %v1400_v3  ;;  %v465_v9 = vld [vmem:[%s1536_s24] sm:$0xff]  ;;  %v633_v13 = vld [vmem:[%s1552_s28 + $0x8] sm:$0xff] }
  0x34   : > { %1193 = vmatpush3.msra.mxu1 %v553_v4  ;;  %1182 = vmatpush3.msra.mxu0 %v468_v5  ;;  %v466_v10 = vld [vmem:[%s1542_s15] sm:$0xff] }
  0x35   : > { %1194 = vmatprep.subr.mxu1 %v1400_v3  ;;  %1183 = vmatprep.subr.mxu0 %v1400_v3  ;;  %v632_v14 = vld [vmem:[%s1552_s28] sm:$0xff] }
  0x36   : > { %1195 = vmatpush3.msra.mxu1 %v552_v6  ;;  %1184 = vmatpush3.msra.mxu0 %v467_v7  ;;  %v1141_v15 = vld [vmem:[%s451_s19] ss:$0 sm:$0xff] }
  0x37   : > { %1196 = vmatprep.subr.mxu1 %v1400_v3  ;;  %1198 = vmatprep.mubr.msk.f32.mxu1 %vm1401_vm2, %v1400_v3  ;;  %v1139_v17 = vld [vmem:[%s448_s17] ss:$0 sm:$0xff] }
  0x38   : > { %1197 = vmatpush3.msra.mxu1 %v551_v8  ;;  %1185 = vmatprep.subr.mxu0 %v1400_v3  ;;  %v1143_v26 = vld [vmem:[%s454_s9] ss:$0 sm:$0xff] }
  0x39   : > { %1199 = vmatmul.mubr.msk.f32.vlgmr.msra.gmra.mxu1 %vm477_vm1, %v465_v9  ;;  %1186 = vmatpush3.msra.mxu0 %v466_v10  ;;  %v875_v35 = vld [vmem:[%s1570_s21] sm:$0xff] }
  0x3a   : > { %1187 = vmatprep.mubr.msk.f32.mxu0 %vm1401_vm2, %v1400_v3  ;;  %1212 = vmatprep.subr.mxu1 %v1400_v3  ;;  %v874_v41 = vld [vmem:[#allocation2] sm:$0xff] }
  0x3b   : > { %1188 = vmatmul.mubr.msk.f32.vlgmr.msra.gmra.mxu0 %vm477_vm1, %v465_v9  ;;  %1214 = vmatprep.mubr.msk.f32.mxu1 %vm1401_vm2, %v1400_v3 }
  0x3c   : > { %1201 = vmatprep.subr.mxu0 %v1400_v3  ;;  %1209 = vmatprep.mubr.msk.f32.mxu0 %vm1401_vm2, %v1400_v3 }
  0x3d   : > { %1202 = vmatpush3.msra.mxu0 %v635_v11 }
  0x3e   : > { %1203 = vmatprep.subr.mxu0 %v1400_v3 }
  0x3f   : > { %1204 = vmatpush3.msra.mxu0 %v634_v12 }
  0x40   : > { %1205 = vmatprep.subr.mxu0 %v1400_v3 }
  0x41   : > { %1206 = vmatpush3.msra.mxu0 %v633_v13 }
  0x42   : > { %1207 = vmatprep.subr.mxu0 %v1400_v3 }
  0x43   : > { %1208 = vmatpush3.msra.mxu0 %v632_v14 }
  0x44   : > { %1210 = vmatmul.mubr.msk.f32.vlgmr.msra.gmra.mxu0 %vm477_vm1, %v465_v9  ;;  %1222 = vmatprep.subr.mxu0 %v1400_v3 }
  0x45   : > { %1224 = vmatprep.mubr.msk.f32.mxu0 %vm1401_vm2, %v1400_v3  ;;  %1223 = vmatpush3.msra.mxu0 %v875_v35 }
  0xf9   : > { %v628_v16 = vpop.f32.mrf.mxu1 }
  0xfa   : > { %v629_v18 = vadd.f32 %v1141_v15, %v628_v16 }
  0xfb   : > { %v547_v19 = vpop.f32.mrf.mxu0  ;;  %v1200_v20 = vpop.f32.mrf.mxu1 }
  0xfc   : > { %v548_v21 = vadd.f32 %v1139_v17, %v547_v19  ;;  %1213 = vmatpush3.xpose.msk.msra.mxu1 %vm713_vm3, %v629_v18 }
  0xfd   : > { %v1189_v22 = vpop.f32.mrf.mxu0  ;;  %1217 = vmatprep.subr.mxu1 %v1400_v3 }
  0xff   : > { %1215 = vmatmul.mubr.msk.f32.vlgmr.msra.gmra.mxu1 %vm713_vm3, %v548_v21 }
 0x100   : > { %1219 = vmatprep.mubr.msk.f32.mxu1 %vm1401_vm2, %v1400_v3 }
 0x104   : > { %v709_v27 = vpop.f32.mrf.mxu0 }
 0x105   : > { %v710_v28 = vadd.f32 %v1143_v26, %v709_v27 }
 0x106   : > { %v1211_v29 = vpop.f32.mrf.mxu0 }
 0x107   : > { %1218 = vmatpush3.msra.mxu1 %v710_v28 }
 0x1bf   : > { %v786_v23 = vpop.f32.mrf.mxu1 }
 0x1c0   : > { %v790_v24 = vsel %vm713_vm3, %v786_v23, -inf }
 0x1c1   : > { %791 = vmax.xlane.f32.xlu0 %v790_v24  ;;  %v1216_v25 = vpop.f32.mrf.mxu1 }
 0x24a   : > { %v792_v30 = vpop.xlane.xlu0 %791 }
 0x24b   : > { %v793_v31 = vsub.f32 %v786_v23, %v792_v30 }
 0x24d   : > { %v794_v32 = vmul.f32 1.442695, %v793_v31 }
 0x24f   : > { %1301 = vpow2.f32 %v794_v32 }
 0x25c   : > { %v1302_v33 = vpop.eup %1301 }
 0x25d   : > { %1220 = vmatmul.mubr.msk.f32.vlgmr.msra.gmra.mxu1 %vm713_vm3, %v1302_v33  ;;  %v796_v34 = vsel %vm713_vm3, %v1302_v33, 0.0 }
 0x25e   : > { %797 = vadd.xlane.f32.xlu0 %v796_v34 }
 0x2e7   : > { %v798_v36 = vpop.xlane.xlu0 %797 }
 0x2e8   : > { %1303 = vrcp.f32 %v798_v36 }
 0x2f5   : > { %v1304_v37 = vpop.eup %1303 }
 0x31d   : > { %v868_v38 = vpop.f32.mrf.mxu1 }
 0x31e   : > { %v873_v39 = vmul.f32 %v1304_v37, %v868_v38 }
 0x31f   : > { %v1221_v40 = vpop.f32.mrf.mxu1 }
 0x320   : > { %1225 = vmatmul.mubr.msk.f32.vlgmr.msra.gmra.mxu0 %vm713_vm3, %v873_v39 }
 0x3df   : > { %954 = sbr.rel (%p1149_p1) target bundleno = 1006 (0x3ee), region = 64 }
 0x3e0   : > { %v945_v42 = vpop.f32.mrf.mxu0 }
 0x3e1   : > { %v949_v43 = vadd.f32 %v945_v42, %v874_v41 }
 0x3e2   : > { %v1226_v44 = vpop.f32.mrf.mxu0 }
 0x3e3   : > { %950 = vst.msk [vmem:[#allocation2] sm:$0xff] %vm477_vm1, %v949_v43 }
 0x3e4   : > { %v1150_v46 = vld [vmem:[%s1682_s8] ss:$0 sm:$0xff] }
 0x3ea   : > { %v955_v45 = vld [vmem:[#allocation2] sm:$0xff] }
 0x3eb   : > { %v963_v47 = vadd.f32 %v1150_v46, %v955_v45 }
 0x3ed   : > { %964 = vst.msk [vmem:[%s426_s30] sm:$0xff] %vm477_vm1, %v963_v47 }
 0x3ee PF: > { %s1152_s22 = sshll.u32 %s1385_s13, 7  ;;  %s1716_s12 = sld [smem:[#allocation19_spill]] }
 0x3ef   : > { %s979_s17 = sshll.u32 %s426_s30, 4  ;;  %s1718_s23 = sand.u32 1, %s1373_s10   ;;  %s980_s17 = int_to_ptr.vmem [resolvable:$true] %s979_s17 }
 0x3f0   : > { %s966_s19 = scalar_lea.sflag [#allocation4], %s1718_s23  ;;  %s1305_s26 = scalar_lea.vmem %s980_s17, 128 }
 0x3f1   : > { %p1306_p2 = scmp.ne.s32.totalorder %s980_s17, %s1305_s26  ;;  %s1402_s14 = smov [#allocation3]  }
 0x3f2   : > { %s1309_s25 = sshll.u32 %s1402_s14, 4  ;;  %s1310_s25 = int_to_ptr.vmem [resolvable:$false] %s1309_s25 }
 0x3f3   : > { %p1307_p4 = pnand %p1306_p2, %p1502_p3  ;;  %s1311_s0 = scalar_lea.vmem %s1310_s25, 256 }
 0x3f4   : > { %s1717_s28 = smov %s1716_s12  ;;  %s977_s18 = scalar_lea.hbm %s1716_s12, %s1152_s22 }
 0x3f5   : > { %p1308_p5 = pneg %p1307_p4  ;;  %p1312_p6 = scmp.lt.s32.totalorder %s980_s17, %s1310_s25 }
 0x3f6   : > { %p1313_p7 = scmp.lt.s32.totalorder %s1311_s0, %s1305_s26 }
 0x3f8   : > { %p1314_p8 = por %p1313_p7, %p1312_p6 }
 0x3fa   : > { %p1315_p10 = pnand %p1314_p8, %p1308_p5 }
 0x3fc   : > { %1318 = shalt.err (!%p1315_p10)
}
 0x3fd   : > { %s1319_s13 = scalar_lea.hbm %s977_s18, 128  ;;  %s1323_s1 = scalar_lea.hbm %s1717_s28, 256 }
 0x3fe   : > { %p1320_p11 = scmp.ne.s32.totalorder %s977_s18, %s1319_s13  ;;  %p1324_p0 = scmp.lt.s32.totalorder %s977_s18, %s1717_s28 }
 0x3ff   : > { %p1325_p1 = scmp.lt.s32.totalorder %s1323_s1, %s1319_s13 }
 0x400   : > { %p1321_p12 = pnand %p1320_p11, %p1502_p3 }
 0x401   : > { %p1326_p2 = por %p1325_p1, %p1324_p0 }
 0x402   : > { %p1322_p13 = pneg %p1321_p12 }
 0x404   : > { %p1327_p4 = pnand %p1326_p2, %p1322_p13 }
 0x406   : > { %1330 = shalt.err (!%p1327_p4)
}
 0x407   : > { %1227 = dma.vmem_to_hbm [thread:$0]  (%p1502_p3), %s980_s17, 128, %s977_s18, %s966_s19  }
 0x408 PF: > { %s1719_s15 = sld [smem:[#allocation10_spill]] }
 0x409   : > { %s1720_s16 = sld [smem:[#allocation6_spill]] }
 0x40e   : > { %p1233_p5 = scmp.ge.s32.totalorder %s1719_s15, 2 }
 0x40f   : > { %s991_s20 = sand.u32 1, %s1720_s16  }
 0x410   : > { %p1230_p6 = pnand %p1233_p5, %p1512_p9  ;;  %s992_s22 = scalar_lea.sflag [#allocation4], %s991_s20 }
 0x412   : > { %p1231_p7 = pneg %p1230_p6 }
 0x414   : > { %1364 = dma.done.wait (%p1231_p7), %s992_s22, 128  }
 0x415   : > { %1366 = vsyncadd (%p1231_p7), %s992_s22, 4294967168  ;;  %s22_s16 = sadd.s32 1, %s1719_s15   ;;  %s1722_s29 = sld [smem:[#allocation7_spill]] }
 0x416   : > { %p19_p8 = scmp.ge.s32.totalorder %s22_s16, 10   ;;  %s1723_s11 = sld [smem:[#allocation15_spill]] }
 0x417   : > { %s1724_s12 = sld [smem:[#allocation8_spill]]  ;;  %s1728_s30 = smov %s1373_s10 }
 0x418   : > { %s1725_s13 = sld [smem:[#allocation9_spill]]  ;;  %21 = sbr.rel (!%p19_p8) target bundleno = 10 (0xa), region = 120 }
 0x419   : > { %s1726_s14 = sld [smem:[#allocation11_spill]] }
 0x41a   : > { %s1727_s15 = sld [smem:[#allocation13_spill]] }
 0x41b   : > { %s1729_s10 = smov %s1722_s29 }
 0x41d   :  { %997 = vsyncpa [#allocation4], 1 }
 0x41e   :  { %999 = vsyncpa [#allocation4 + $0x1], 1 }

</bundles_post_ra>
